<compile_context>
chip_gen: v7x
topology: tpu7x:2x2x1
jax: 0.10.0
libtpu: 0.0.40
codegen_flags: <defaults>
</compile_context>

<pallas_src>
import functools
import math

import jax
import jax.numpy as jnp
from jax.experimental import pallas as pl
from jax.experimental.pallas import tpu as pltpu

_LANE = 128     # lane width: padded (internal) feature dims are multiples of this
_SUBLANE = 8    # f32 sublane height: batch buckets/tiles are multiples of this


def _round_up(x, m):
    return ((x + m - 1) // m) * m


def _bucket_batch(batch):
    """Bucket the (padded) batch so the Pallas kernel compiles once per bucket."""
    batch = max(int(batch), 1)
    for b in (8, 32, 128, 256, 512):
        if batch <= b:
            return b
    return _round_up(batch, 512)


def _choose_batch_tile(padded_batch):
    """<=256 rows: one fat step (single-TC v5e/v6e friendly).
    >=512 rows: >=2 steps of <=512 rows so the parallel grid shards across
    v7x's two TensorCores while steps stay big enough to hide per-step cost."""
    if padded_batch <= 256:
        return padded_batch
    return min(512, padded_batch // 2)


def _fused_mlp_kernel(*refs, num_layers: int):
    """refs = (x_ref, w0, b0, w1, b1, ..., w_{L-1}, b_{L-1}, o_ref).

    Chains all layers in VMEM: MXU matmul + VPU bias add (+ ReLU on hidden
    layers).  Activations never leave VMEM; only the final (tile, out_features)
    slab is stored.
    """
    x_ref = refs[0]
    o_ref = refs[-1]
    h = x_ref[...]
    for layer in range(num_layers):
        w_ref = refs[1 + 2 * layer]
        b_ref = refs[2 + 2 * layer]
        h = jnp.dot(h, w_ref[...], preferred_element_type=jnp.float32)
        h = h + b_ref[...]            # (1, n) broadcasts over the batch tile
        if layer < num_layers - 1:    # ReLU after every hidden layer, not last
            h = jnp.maximum(h, 0.0)
    o_ref[...] = h.astype(o_ref.dtype)


@jax.jit
def _mlp_forward(x, params):
    """Fused forward pass.  `x` is (padded_batch, in_features) with
    padded_batch already bucketed to a multiple of 8; `params` is a list of
    (w, b) whose internal dims are lane-padded at init (layer-0 K and last-layer
    N keep their true widths, so no feature pad/slice is needed per call)."""
    padded_batch, _ = x.shape
    num_layers = len(params)
    out_dim = params[-1][0].shape[1]          # true out_features (unpadded)

    batch_tile = _choose_batch_tile(padded_batch)
    grid = (padded_batch // batch_tile,)

    flat_params = []
    in_specs = [pl.BlockSpec((batch_tile, x.shape[1]), lambda i: (i, 0))]
    for w, b in params:
        flat_params.append(w)
        flat_params.append(b)
        # Weights/bias: full (pre-padded) arrays, same block every grid step.
        # TODO(synk): pipeline_mode=pl.Buffered(1) would halve resident weight
        # VMEM for very wide nets; left at the default double-buffering here.
        in_specs.append(pl.BlockSpec(w.shape, lambda i: (0, 0)))
        in_specs.append(pl.BlockSpec(b.shape, lambda i: (0, 0)))

    # Resident VMEM (double-buffered inputs/outputs + weights); only pass an
    # explicit limit when the default scoped limit would not suffice.
    vmem_need = (2 * batch_tile * x.shape[1] * x.dtype.itemsize
                 + 2 * batch_tile * out_dim * 4
                 + 2 * sum(w.nbytes + b.nbytes for w, b in params))
    compiler_kwargs = {"dimension_semantics": ("parallel",)}
    if vmem_need > (16 << 20):
        compiler_kwargs["vmem_limit_bytes"] = min(vmem_need + (2 << 20), 64 << 20)

    kernel = functools.partial(_fused_mlp_kernel, num_layers=num_layers)

    return pl.pallas_call(
        kernel,
        out_shape=jax.ShapeDtypeStruct((padded_batch, out_dim), jnp.float32),
        grid=grid,
        in_specs=in_specs,
        out_specs=pl.BlockSpec((batch_tile, out_dim), lambda i: (i, 0)),
        compiler_params=pltpu.CompilerParams(**compiler_kwargs),
    )(x, *flat_params)


def init_linear_params(key, in_features, out_features, *, pad_in, pad_out):
    """Deterministic init mimicking torch.nn.Linear default:
    U(-1/sqrt(in), 1/sqrt(in)) for weight and bias.  Internal dims are
    zero-padded to lane width at init (padded rows/cols contribute nothing);
    the network's true input (K of layer 0) and output (N of the last layer)
    widths are kept unpadded so the per-call wrapper does no feature pad/slice."""
    kw, kb = jax.random.split(key)
    bound = 1.0 / math.sqrt(in_features)
    w = jax.random.uniform(
        kw, (in_features, out_features), jnp.float32, minval=-bound, maxval=bound
    )
    b = jax.random.uniform(
        kb, (out_features,), jnp.float32, minval=-bound, maxval=bound
    )
    k_dim = _round_up(in_features, _LANE) if pad_in else in_features
    n_dim = _round_up(out_features, _LANE) if pad_out else out_features
    w_pad = jnp.zeros((k_dim, n_dim), jnp.float32).at[:in_features, :out_features].set(w)
    b_pad = jnp.zeros((1, n_dim), jnp.float32).at[0, :out_features].set(b)
    return w_pad, b_pad


class LinearQNetPallas:
    """JAX/Pallas equivalent of the PyTorch LinearQNet forward pass.
    All Linear(+ReLU) layers run in a single fused, jitted Pallas kernel."""

    def __init__(self, input_size, hidden_layers, output_size, key):
        self.input_size = input_size
        self.output_size = output_size
        self.params = []
        in_size = input_size
        sizes = list(hidden_layers) + [output_size]
        keys = jax.random.split(key, len(sizes))
        for idx, (k, out_size) in enumerate(zip(keys, sizes)):
            self.params.append(
                init_linear_params(
                    k, in_size, out_size,
                    pad_in=(idx > 0),                  # hidden K dims lane-padded
                    pad_out=(idx < len(sizes) - 1),    # last layer keeps true N
                )
            )
            in_size = out_size

    def __call__(self, x):
        squeeze = x.ndim == 1
        if squeeze:                      # match nn.Linear's 1-D input handling
            x = x[None, :]
        batch = x.shape[0]
        padded_batch = _bucket_batch(batch)
        if padded_batch != batch:
            # Batch-dim-only pad (tiny), done outside the jitted kernel so the
            # Mosaic compile is keyed on the bucket, not the raw batch size.
            x = jnp.pad(x.astype(jnp.float32), ((0, padded_batch - batch), (0, 0)))
        else:
            x = x.astype(jnp.float32)
        y = _mlp_forward(x, self.params)
        if padded_batch != batch:
            y = y[:batch]
        return y[0] if squeeze else y


if __name__ == "__main__":
    # Small shapes consistent with a Q-network: state dim 11, two hidden
    # layers of 32, 4 actions, batch of 2.
    input_size = 11
    hidden_layers = [32, 32]
    output_size = 4
    batch = 2

    root_key = jax.random.PRNGKey(0)
    pkey, xkey = jax.random.split(root_key)

    model = LinearQNetPallas(input_size, hidden_layers, output_size, pkey)
    x = jax.random.normal(xkey, (batch, input_size), dtype=jnp.float32)

    out = model(x)
    jax.block_until_ready(out)

    assert out.shape == (batch, output_size), out.shape
    assert out.dtype == jnp.float32

    # Pure-JAX reference on the same (pre-padded) params: padded weight
    # rows/cols are zero so this equals the true unpadded network.
    def ref_forward(x, params):
        h = x
        n = len(params)
        for i, (w, b) in enumerate(params):
            h = h @ w + b
            if i < n - 1:
                h = jnp.maximum(h, 0.0)
        return h

    ref = ref_forward(x, model.params)
    assert jnp.allclose(out, ref, atol=1e-5, rtol=1e-5), (out, ref)

    print("KERNEL_OK")
</pallas_src>

<mosaic_0001>
module attributes {stable_mosaic.version = 11 : i64} {
  func.func @_fused_mlp_kernel(%arg0: i32, %arg1: memref<8x11xf32, #tpu.memory_space<vmem>>, %arg2: memref<11x128xf32, #tpu.memory_space<vmem>>, %arg3: memref<1x128xf32, #tpu.memory_space<vmem>>, %arg4: memref<128x128xf32, #tpu.memory_space<vmem>>, %arg5: memref<1x128xf32, #tpu.memory_space<vmem>>, %arg6: memref<128x4xf32, #tpu.memory_space<vmem>>, %arg7: memref<1x4xf32, #tpu.memory_space<vmem>>, %arg8: memref<8x4xf32, #tpu.memory_space<vmem>>) attributes {dimension_semantics = [#tpu.dimension_semantics<parallel>], iteration_bounds = array<i64: 1>, scalar_prefetch = 0 : i64, scratch_operands = 0 : i64, tpu.core_type = #tpu.core_type<tc>, window_params = [{transform_indices = @transform_0, window_bounds = array<i64: 8, 11>}, {pipeline_mode = #tpu.pipeline_mode<synchronous>, transform_indices = @transform_1, window_bounds = array<i64: 11, 128>}, {pipeline_mode = #tpu.pipeline_mode<synchronous>, transform_indices = @transform_2, window_bounds = array<i64: 1, 128>}, {pipeline_mode = #tpu.pipeline_mode<synchronous>, transform_indices = @transform_3, window_bounds = array<i64: 128, 128>}, {pipeline_mode = #tpu.pipeline_mode<synchronous>, transform_indices = @transform_4, window_bounds = array<i64: 1, 128>}, {pipeline_mode = #tpu.pipeline_mode<synchronous>, transform_indices = @transform_5, window_bounds = array<i64: 128, 4>}, {pipeline_mode = #tpu.pipeline_mode<synchronous>, transform_indices = @transform_6, window_bounds = array<i64: 1, 4>}, {transform_indices = @transform_7, window_bounds = array<i64: 8, 4>}]} {
    %c0 = arith.constant 0 : index
    %c0_0 = arith.constant 0 : index
    %0 = vector.load %arg1[%c0, %c0_0] : memref<8x11xf32, #tpu.memory_space<vmem>>, vector<8x11xf32>
    %c0_1 = arith.constant 0 : index
    %c0_2 = arith.constant 0 : index
    %1 = vector.load %arg2[%c0_1, %c0_2] : memref<11x128xf32, #tpu.memory_space<vmem>>, vector<11x128xf32>
    %cst = arith.constant dense<0.000000e+00> : vector<8x128xf32>
    %2 = tpu.matmul %0, %1, %cst {dimension_numbers = #tpu.dot_dimension_numbers<[1], [0], [0], [1], [0, 0, 1, 1], [], []>} : vector<8x11xf32>, vector<11x128xf32>, vector<8x128xf32> -> vector<8x128xf32>
    %c0_3 = arith.constant 0 : index
    %c0_4 = arith.constant 0 : index
    %3 = vector.load %arg3[%c0_3, %c0_4] : memref<1x128xf32, #tpu.memory_space<vmem>>, vector<1x128xf32>
    %4 = vector.broadcast %3 : vector<1x128xf32> to vector<8x128xf32>
    %5 = arith.addf %2, %4 : vector<8x128xf32>
    %cst_5 = arith.constant 0.000000e+00 : f32
    %6 = vector.broadcast %cst_5 : f32 to vector<8x128xf32>
    %7 = arith.maximumf %5, %6 : vector<8x128xf32>
    %c0_6 = arith.constant 0 : index
    %c0_7 = arith.constant 0 : index
    %8 = vector.load %arg4[%c0_6, %c0_7] : memref<128x128xf32, #tpu.memory_space<vmem>>, vector<128x128xf32>
    %cst_8 = arith.constant dense<0.000000e+00> : vector<8x128xf32>
    %9 = tpu.matmul %7, %8, %cst_8 {dimension_numbers = #tpu.dot_dimension_numbers<[1], [0], [0], [1], [0, 0, 1, 1], [], []>} : vector<8x128xf32>, vector<128x128xf32>, vector<8x128xf32> -> vector<8x128xf32>
    %c0_9 = arith.constant 0 : index
    %c0_10 = arith.constant 0 : index
    %10 = vector.load %arg5[%c0_9, %c0_10] : memref<1x128xf32, #tpu.memory_space<vmem>>, vector<1x128xf32>
    %11 = vector.broadcast %10 : vector<1x128xf32> to vector<8x128xf32>
    %12 = arith.addf %9, %11 : vector<8x128xf32>
    %cst_11 = arith.constant 0.000000e+00 : f32
    %13 = vector.broadcast %cst_11 : f32 to vector<8x128xf32>
    %14 = arith.maximumf %12, %13 : vector<8x128xf32>
    %c0_12 = arith.constant 0 : index
    %c0_13 = arith.constant 0 : index
    %15 = vector.load %arg6[%c0_12, %c0_13] : memref<128x4xf32, #tpu.memory_space<vmem>>, vector<128x4xf32>
    %cst_14 = arith.constant dense<0.000000e+00> : vector<8x4xf32>
    %16 = tpu.matmul %14, %15, %cst_14 {dimension_numbers = #tpu.dot_dimension_numbers<[1], [0], [0], [1], [0, 0, 1, 1], [], []>} : vector<8x128xf32>, vector<128x4xf32>, vector<8x4xf32> -> vector<8x4xf32>
    %c0_15 = arith.constant 0 : index
    %c0_16 = arith.constant 0 : index
    %17 = vector.load %arg7[%c0_15, %c0_16] : memref<1x4xf32, #tpu.memory_space<vmem>>, vector<1x4xf32>
    %18 = vector.broadcast %17 : vector<1x4xf32> to vector<8x4xf32>
    %19 = arith.addf %16, %18 : vector<8x4xf32>
    %c0_17 = arith.constant 0 : index
    %c0_18 = arith.constant 0 : index
    %20 = vector.load %arg8[%c0_17, %c0_18] : memref<8x4xf32, #tpu.memory_space<vmem>>, vector<8x4xf32>
    tpu.vector_store %arg8[%c0_17, %c0_18], %19 {strides = array<i32>} : memref<8x4xf32, #tpu.memory_space<vmem>>, vector<8x4xf32>,
    return
  }
  func.func @transform_0(%arg0: i32) -> (i32, i32) {
    %c0_i32 = arith.constant 0 : i32
    %c0_i32_0 = arith.constant 0 : i32
    return %arg0, %c0_i32 : i32, i32
  }
  func.func @transform_1(%arg0: i32) -> (i32, i32) {
    %c0_i32 = arith.constant 0 : i32
    %c0_i32_0 = arith.constant 0 : i32
    %c0_i32_1 = arith.constant 0 : i32
    return %c0_i32, %c0_i32_0 : i32, i32
  }
  func.func @transform_2(%arg0: i32) -> (i32, i32) {
    %c0_i32 = arith.constant 0 : i32
    %c0_i32_0 = arith.constant 0 : i32
    %c0_i32_1 = arith.constant 0 : i32
    return %c0_i32, %c0_i32_0 : i32, i32
  }
  func.func @transform_3(%arg0: i32) -> (i32, i32) {
    %c0_i32 = arith.constant 0 : i32
    %c0_i32_0 = arith.constant 0 : i32
    %c0_i32_1 = arith.constant 0 : i32
    return %c0_i32, %c0_i32_0 : i32, i32
  }
  func.func @transform_4(%arg0: i32) -> (i32, i32) {
    %c0_i32 = arith.constant 0 : i32
    %c0_i32_0 = arith.constant 0 : i32
    %c0_i32_1 = arith.constant 0 : i32
    return %c0_i32, %c0_i32_0 : i32, i32
  }
  func.func @transform_5(%arg0: i32) -> (i32, i32) {
    %c0_i32 = arith.constant 0 : i32
    %c0_i32_0 = arith.constant 0 : i32
    %c0_i32_1 = arith.constant 0 : i32
    return %c0_i32, %c0_i32_0 : i32, i32
  }
  func.func @transform_6(%arg0: i32) -> (i32, i32) {
    %c0_i32 = arith.constant 0 : i32
    %c0_i32_0 = arith.constant 0 : i32
    %c0_i32_1 = arith.constant 0 : i32
    return %c0_i32, %c0_i32_0 : i32, i32
  }
  func.func @transform_7(%arg0: i32) -> (i32, i32) {
    %c0_i32 = arith.constant 0 : i32
    %c0_i32_0 = arith.constant 0 : i32
    return %arg0, %c0_i32 : i32, i32
  }
}

</mosaic_0001>

<bundles_post_ra>
// kernel: _mlp_forward.1
= control target key start
LH: loop header
LB: loop body
LE: loop exit
PB: predicated region body
PF: predicated region fallthrough
CT: control target
= control target key end

     0   :  { %12 = vsyncpa [#allocation3], 0  ;;  %s525_s24 = smov [#allocation2]   ;;  %s715_s0 = inlined_call_operand.vmem [shape: f32[8,11], index: 0, kind: input, shape index: {}]   ;;  %s716_s1 = inlined_call_operand.hbm [shape: f32[11,128], index: 1, kind: input, shape index: {}]   ;;  %s717_s2 = inlined_call_operand.vmem [shape: f32[1,128], index: 2, kind: input, shape index: {}]   ;;  %s718_s3 = inlined_call_operand.vmem [shape: f32[128,128], index: 3, kind: input, shape index: {}]   ;;  %s719_s4 = inlined_call_operand.vmem [shape: f32[1,128], index: 4, kind: input, shape index: {}]   ;;  %s720_s5 = inlined_call_operand.vmem [shape: f32[128,4], index: 5, kind: input, shape index: {}]   ;;  %s721_s6 = inlined_call_operand.vmem [shape: f32[1,4], index: 6, kind: input, shape index: {}]   ;;  %s722_s7 = inlined_call_operand.vmem [shape: f32[8,4], index: 7, kind: output, shape index: {}]  }
   0x1   :  { %s20_s25 = sshll.u32 %s525_s24, 4  ;;  %s501_s28 = scalar_lea.hbm %s716_s1, 256  ;;  %s21_s25 = int_to_ptr.vmem [resolvable:$true] %s20_s25 }
   0x2   :  { %p502_p0 = scmp.ne.s32.totalorder %s716_s1, %s501_s28  ;;  %p505_p1 = scmp.lt.u32.totalorder %s501_s28, %s716_s1 }
   0x4   :  { %p507_p2 = pnand %p505_p1, %p502_p0 }
   0x6   :  { %510 = shalt.err (!%p507_p2)
}
   0x7   :  { %s511_s10 = scalar_lea.vmem %s21_s25, 256  ;;  %p516_p4 = scmp.lt.s32.totalorder %s21_s25, %s21_s25 }
   0x8   :  { %p512_p3 = scmp.ne.s32.totalorder %s21_s25, %s511_s10  ;;  %p517_p5 = scmp.lt.s32.totalorder %s511_s10, %s511_s10 }
   0xa   :  { %p518_p6 = por %p517_p5, %p516_p4 }
   0xc   :  { %p519_p7 = pnand %p518_p6, %p512_p3 }
   0xe   :  { %522 = shalt.err (!%p519_p7)
}
   0xf   :  { %s526_s11 = smov 128   ;;  %s527_s12 = smov 8  }
  0x10   :  { %26 = dma.hbm_to_vmem [thread:$0]  %s716_s1, 256, %s21_s25, [#allocation3], %s526_s11, %s526_s11, %s527_s12  }
  0x11   :  { %523 = dma.done.wait [#allocation3], 256  }
  0x12   :  { %524 = vsyncadd [#allocation3], 4294967040  ;;  %v528_v0 = vmov 0.0|0.0   ;;  %vm529_vm0 = vmmov 0   ;;  %v530_v1 = vmov 0.0   ;;  %vm54_vm1 = vcmask 1042432  }
  0x13   :  { %442 = vmatprep.subr.bf16.mxu0 %v528_v0  ;;  %446 = vmatprep.subr.bf16.mxu1 %v528_v0  ;;  %v41_v2 = vld [vmem:[#allocation2] sm:$0xff]  ;;  %v42_v3 = vld [vmem:[#allocation2 + $0x8] sm:$0x7]  ;;  %vm531_vm2 = vmmov 1   ;;  %v131_v7 = vld [vmem:[%s718_s3 + $0x10] sm:$0xff]  ;;  %vm50_vm4 = vcmask 89088  }
  0x14   :  { %369 = vmatprep.mubr.msk.f32.mxu0 %vm529_vm0, %v530_v1  ;;  %404 = vmatprep.mubr.msk.f32.mxu1 %vm529_vm0, %v530_v1  ;;  %vm444_vm3 = vmpackc.low %vm54_vm1, %vm531_vm2  ;;  %v443_v4 = vpack.c.bf16 %v42_v3, %v41_v2  ;;  %v129_v5 = vld [vmem:[%s718_s3] sm:$0xff]  ;;  %v130_v6 = vld [vmem:[%s718_s3 + $0x8] sm:$0xff]  ;;  %vm316_vm5 = vcmask 31744  }
  0x15   :  { %v447_v8 = vpack.c.bf16 %v130_v6, %v129_v5  ;;  %v132_v9 = vld [vmem:[%s718_s3 + $0x18] sm:$0xff]  ;;  %v40_v10 = vld [vmem:[%s715_s0] sm:$0xff]  ;;  %v134_v13 = vld [vmem:[%s718_s3 + $0x28] sm:$0xff] }
  0x16   :  { %445 = vmatpush3.bf16.msk.msra.mxu0 %vm444_vm3, %v443_v4  ;;  %v450_v11 = vpack.c.bf16 %v132_v9, %v131_v7  ;;  %v133_v12 = vld [vmem:[%s718_s3 + $0x20] sm:$0xff]  ;;  %v135_v15 = vld [vmem:[%s718_s3 + $0x30] sm:$0xff]  ;;  %v136_v16 = vld [vmem:[%s718_s3 + $0x38] sm:$0xff] }
  0x17   :  { %448 = vmatpush3.bf16.msra.mxu1 %v447_v8  ;;  %470 = vmatprep.subr.bf16.mxu0 %v528_v0  ;;  %v453_v14 = vpack.c.bf16 %v134_v13, %v133_v12  ;;  %v456_v17 = vpack.c.bf16 %v136_v16, %v135_v15  ;;  %v137_v18 = vld [vmem:[%s718_s3 + $0x40] sm:$0xff]  ;;  %v138_v19 = vld [vmem:[%s718_s3 + $0x48] sm:$0xff]  ;;  %v139_v21 = vld [vmem:[%s718_s3 + $0x50] sm:$0xff] }
  0x18   :  { %449 = vmatprep.subr.bf16.mxu1 %v528_v0  ;;  %v459_v20 = vpack.c.bf16 %v138_v19, %v137_v18  ;;  %v140_v22 = vld [vmem:[%s718_s3 + $0x58] sm:$0xff]  ;;  %v141_v24 = vld [vmem:[%s718_s3 + $0x60] sm:$0xff]  ;;  %v142_v25 = vld [vmem:[%s718_s3 + $0x68] sm:$0xff] }
  0x19   :  { %370 = vmatmul.mubr.msk.f32.vlgmr.msra.gmra.mrb[0].mxu0 %vm50_vm4, %v40_v10  ;;  %v462_v23 = vpack.c.bf16 %v140_v22, %v139_v21  ;;  %v465_v26 = vpack.c.bf16 %v142_v25, %v141_v24  ;;  %v143_v27 = vld [vmem:[%s718_s3 + $0x70] sm:$0xff]  ;;  %v144_v28 = vld [vmem:[%s718_s3 + $0x78] sm:$0xff]  ;;  %v223_v30 = vld [vmem:[%s720_s5] sm:$0xff] }
  0x1a   :  { %439 = vmatprep.mubr.msk.f32.mxu0 %vm529_vm0, %v530_v1  ;;  %v468_v29 = vpack.c.bf16 %v144_v28, %v143_v27  ;;  %v224_v31 = vld [vmem:[%s720_s5 + $0x8] sm:$0xff]  ;;  %v225_v32 = vld [vmem:[%s720_s5 + $0x10] sm:$0xff]  ;;  %v226_v34 = vld [vmem:[%s720_s5 + $0x18] sm:$0xff] }
  0x1b   :  { %451 = vmatpush3.bf16.msra.mxu1 %v450_v11  ;;  %v471_v33 = vpack.c.bf16 %v224_v31, %v223_v30  ;;  %v474_v35 = vpack.c.bf16 %v226_v34, %v225_v32  ;;  %v227_v36 = vld [vmem:[%s720_s5 + $0x20] sm:$0xff]  ;;  %v228_v37 = vld [vmem:[%s720_s5 + $0x28] sm:$0xff]  ;;  %v229_v39 = vld [vmem:[%s720_s5 + $0x30] sm:$0xff] }
  0x1c   :  { %452 = vmatprep.subr.bf16.mxu1 %v528_v0  ;;  %v477_v38 = vpack.c.bf16 %v228_v37, %v227_v36  ;;  %v230_v40 = vld [vmem:[%s720_s5 + $0x38] sm:$0xff]  ;;  %v231_v42 = vld [vmem:[%s720_s5 + $0x40] sm:$0xff]  ;;  %v232_v43 = vld [vmem:[%s720_s5 + $0x48] sm:$0xff] }
  0x1d   :  { %472 = vmatpush3.bf16.msra.mxu0 %v471_v33  ;;  %v480_v41 = vpack.c.bf16 %v230_v40, %v229_v39  ;;  %v483_v44 = vpack.c.bf16 %v232_v43, %v231_v42  ;;  %v233_v45 = vld [vmem:[%s720_s5 + $0x50] sm:$0xff]  ;;  %v234_v46 = vld [vmem:[%s720_s5 + $0x58] sm:$0xff]  ;;  %v235_v48 = vld [vmem:[%s720_s5 + $0x60] sm:$0xff] }
  0x1e   :  { %473 = vmatprep.subr.bf16.mxu0 %v528_v0  ;;  %v486_v47 = vpack.c.bf16 %v234_v46, %v233_v45  ;;  %v236_v49 = vld [vmem:[%s720_s5 + $0x68] sm:$0xff]  ;;  %v323_v51 = vld [vmem:[%s717_s2] ss:$0 sm:$0xff]  ;;  %v237_v56 = vld [vmem:[%s720_s5 + $0x70] sm:$0xff] }
  0x1f   :  { %454 = vmatpush3.bf16.msra.mxu1 %v453_v14  ;;  %v489_v50 = vpack.c.bf16 %v236_v49, %v235_v48  ;;  %v238_v57 = vld [vmem:[%s720_s5 + $0x78] sm:$0xff]  ;;  %v326_v59 = vld [vmem:[%s719_s4] ss:$0 sm:$0xff] }
  0x20   :  { %455 = vmatprep.subr.bf16.mxu1 %v528_v0  ;;  %v492_v58 = vpack.c.bf16 %v238_v57, %v237_v56 }
  0x21   :  { %475 = vmatpush3.bf16.msra.mxu0 %v474_v35 }
  0x22   :  { %476 = vmatprep.subr.bf16.mxu0 %v528_v0 }
  0x23   :  { %457 = vmatpush3.bf16.msra.mxu1 %v456_v17 }
  0x24   :  { %458 = vmatprep.subr.bf16.mxu1 %v528_v0 }
  0x25   :  { %478 = vmatpush3.bf16.msra.mxu0 %v477_v38 }
  0x26   :  { %479 = vmatprep.subr.bf16.mxu0 %v528_v0 }
  0x27   :  { %460 = vmatpush3.bf16.msra.mxu1 %v459_v20 }
  0x28   :  { %461 = vmatprep.subr.bf16.mxu1 %v528_v0 }
  0x29   :  { %481 = vmatpush3.bf16.msra.mxu0 %v480_v41 }
  0x2a   :  { %482 = vmatprep.subr.bf16.mxu0 %v528_v0 }
  0x2b   :  { %463 = vmatpush3.bf16.msra.mxu1 %v462_v23 }
  0x2c   :  { %464 = vmatprep.subr.bf16.mxu1 %v528_v0 }
  0x2d   :  { %484 = vmatpush3.bf16.msra.mxu0 %v483_v44 }
  0x2e   :  { %485 = vmatprep.subr.bf16.mxu0 %v528_v0 }
  0x2f   :  { %466 = vmatpush3.bf16.msra.mxu1 %v465_v26 }
  0x30   :  { %467 = vmatprep.subr.bf16.mxu1 %v528_v0 }
  0x31   :  { %487 = vmatpush3.bf16.msra.mxu0 %v486_v47 }
  0x32   :  { %488 = vmatprep.subr.bf16.mxu0 %v528_v0 }
  0x33   :  { %469 = vmatpush3.bf16.msra.mxu1 %v468_v29 }
  0x35   :  { %490 = vmatpush3.bf16.msra.mxu0 %v489_v50 }
  0x36   :  { %491 = vmatprep.subr.bf16.mxu0 %v528_v0  ;;  %v327_v0 = vld [vmem:[%s721_s6] ss:$0 sm:$0xff] }
  0x39   :  { %493 = vmatpush3.bf16.msra.mxu0 %v492_v58 }
  0xec   :  { %v124_v52 = vpop.f32.mrb[0].mxu0 }
  0xed   :  { %v125_v53 = vadd.f32 %v323_v51, %v124_v52  ;;  %v371_v54 = vpop.f32.mrb[1].mxu0 }
  0xef   :  { %v128_v55 = vmax.f32 %v125_v53, 0.0 }
  0xf1   :  { %405 = vmatmul.mubr.f32.vlgmr.msra.gmra.mrb[0].mxu1 %v128_v55 }
 0x1c4   :  { %v218_v60 = vpop.f32.mrb[0].mxu1 }
 0x1c5   :  { %v219_v61 = vadd.f32 %v326_v59, %v218_v60  ;;  %v406_v62 = vpop.f32.mrb[1].mxu1 }
 0x1c7   :  { %v222_v63 = vmax.f32 %v219_v61, 0.0 }
 0x1c9   :  { %440 = vmatmul.mubr.f32.vlgmr.msra.gmra.mrb[2].mxu0 %v222_v63 }
 0x29c   :  { %v312_v1 = vpop.f32.mrb[2].mxu0 }
 0x29d   :  { %v313_v2 = vadd.f32 %v327_v0, %v312_v1  ;;  %v441_v3 = vpop.f32.mrb[3].mxu0 }
 0x29f   :  { %317 = vst.msk [vmem:[%s722_s7] sm:$0xff] %vm316_vm5, %v313_v2 }
 0x2a0   :  { %322 = vsyncpa [#allocation3], 1 }

</bundles_post_ra>
